<compile_context>
chip_gen: v7x
topology: tpu7x:2x2x1
jax: 0.10.0
libtpu: 0.0.40
codegen_flags: <defaults>
</compile_context>

<pallas_src>
import functools

import jax
import jax.numpy as jnp
from jax.experimental import pallas as pl
from jax.experimental.pallas import tpu as pltpu

EPS = 1e-5


def _cdiv(a, b):
    return -(-a // b)


def _vmem_scoped_limit():
    """Safe scoped-VMEM budget for the current TPU generation (bytes)."""
    try:
        cap = pltpu.get_tpu_info().vmem_capacity_bytes
    except Exception:
        cap = 64 * 1024 * 1024  # conservative: v7x per-core physical VMEM
    return int(min(cap // 2, 64 * 1024 * 1024))


def _pick_hw_tile(hw, c, itemsize, budget_bytes):
    """Lane-dim tile for (1, C, THW) blocks: multiple of 128 whenever HW >= 128,
    sized to stay under budget_bytes."""
    if hw <= 128:
        return hw                                  # full extent (single small tile)
    per_col_bytes = c * itemsize * 128             # one 128-lane column of the block
    max_cols = max(int(budget_bytes // per_col_bytes), 1)
    if hw % 128 == 0:
        ncols_total = hw // 128
        if ncols_total <= max_cols:
            return hw                              # whole row fits under budget
        best = max(d for d in range(1, max_cols + 1) if ncols_total % d == 0)
        if 2 * best >= max_cols:                   # decent exact divisor -> no tail
            return best * 128
    # Ragged tiling: cdiv grid + tail mask (stats) / masked store (apply).
    return min(max_cols, hw // 128) * 128


# ---------------------------------------------------------------------------
# Fused single-call path (whole x resident in VMEM): stats + fold + apply.
# ---------------------------------------------------------------------------
def _nam_fused_kernel(x_ref, g_ref, b_ref, o_ref, *, eps):
    x32 = x_ref[...].astype(jnp.float32)                       # (N, C, HW)
    m = jnp.float32(x32.shape[0] * x32.shape[2])
    ssum = jnp.sum(jnp.sum(x32, axis=2, keepdims=True), axis=0, keepdims=True)
    ssq = jnp.sum(jnp.sum(x32 * x32, axis=2, keepdims=True), axis=0, keepdims=True)
    mean = ssum / m                                            # (1, C, 1)
    var = jnp.maximum(ssq / m - mean * mean, 0.0)
    inv_std = jax.lax.rsqrt(var + eps)
    g = g_ref[...]                                             # (1, C, 1) f32
    b = b_ref[...]
    abs_g = jnp.abs(g)
    w_bn = abs_g / jnp.sum(abs_g)
    scale = w_bn * g * inv_std
    shift = w_bn * (b - g * mean * inv_std)
    xin = x_ref[...]
    z = scale * xin + shift                                    # promotes to f32
    o_ref[...] = (jax.nn.sigmoid(z) * xin).astype(o_ref.dtype)


# ---------------------------------------------------------------------------
# Pass 1: per-channel lane-wise sum / sum-of-squares partial accumulation.
# Grid (P, N, tiles_per_part); per-p resident (1, C, L) accumulators.
# ---------------------------------------------------------------------------
def _nam_stats_kernel(x_ref, sum_ref, sq_ref, *, hw, thw, tiles_per_part):
    n = pl.program_id(1)
    j = pl.program_id(2)

    @pl.when((n == 0) & (j == 0))
    def _():
        sum_ref[...] = jnp.zeros_like(sum_ref)
        sq_ref[...] = jnp.zeros_like(sq_ref)

    x = x_ref[...].astype(jnp.float32)                         # (1, C, THW)

    if hw % thw != 0:
        # Tail mask for the ragged last tile (input padding is garbage).
        start = (pl.program_id(0) * tiles_per_part + j) * thw
        lane = jax.lax.broadcasted_iota(jnp.int32, x.shape, 2)
        x = jnp.where(start + lane < hw, x, 0.0)

    if thw % 128 == 0:
        # Lane-wise partials: pure VPU adds per step; cross-lane reduce is done
        # once, on the tiny (P, C, 128) outputs, in the wrapper.
        ncols = thw // 128
        s = x[:, :, 0:128]
        q = s * s
        for k in range(1, ncols):
            xk = x[:, :, k * 128:(k + 1) * 128]
            s = s + xk
            q = q + xk * xk
        sum_ref[...] += s
        sq_ref[...] += q
    else:
        # Small-HW case (thw == hw < 128): accumulate elementwise; wrapper reduces.
        sum_ref[...] += x
        sq_ref[...] += x * x


# ---------------------------------------------------------------------------
# Pass 2: elementwise apply with pre-fused per-channel scale/shift.
#   out = sigmoid(scale[c] * x + shift[c]) * x
# ---------------------------------------------------------------------------
def _nam_apply_kernel(x_ref, s_ref, t_ref, o_ref):
    x = x_ref[...]
    z = s_ref[...] * x + t_ref[...]                            # promotes to f32
    o_ref[...] = (jax.nn.sigmoid(z) * x).astype(o_ref.dtype)


def nam_forward(x, gamma, beta, eps=EPS, fused_threshold_bytes=None):
    """x: (N, C, H, W).  gamma, beta: (C,) BatchNorm affine parameters."""
    N, C, H, W = x.shape
    HW = H * W
    x3 = x.reshape(N, C, HW)                  # free reshape of contiguous NCHW
    scoped = _vmem_scoped_limit()

    g32 = gamma.astype(jnp.float32)
    b32 = beta.astype(jnp.float32)

    # ---- Fused single-pass path for small (fully VMEM-resident) activations --
    if fused_threshold_bytes is None:
        fused_threshold_bytes = scoped // 6
    if N * C * HW * 4 <= fused_threshold_bytes:
        out3 = pl.pallas_call(
            functools.partial(_nam_fused_kernel, eps=eps),
            out_shape=jax.ShapeDtypeStruct((N, C, HW), x.dtype),
            compiler_params=pltpu.CompilerParams(vmem_limit_bytes=scoped),
        )(x3, g32.reshape(1, C, 1), b32.reshape(1, C, 1))
        return out3.reshape(N, C, H, W)

    itemsize = jnp.dtype(x.dtype).itemsize
    stats_budget = min(scoped * 2 // 5, 16 * 1024 * 1024)   # read-only sweep: bigger tiles
    apply_budget = min(scoped // 5, 8 * 1024 * 1024)        # in+out double-buffered

    # ---- Pass 1: per-channel statistics (one read of x) ---------------------
    thw_s = _pick_hw_tile(HW, C, itemsize, stats_budget)
    num_tiles_s = _cdiv(HW, thw_s)
    P = 2 if (num_tiles_s >= 2 and num_tiles_s % 2 == 0) else 1
    tpp = num_tiles_s // P
    L = 128 if thw_s % 128 == 0 else thw_s

    s_sum, s_sq = pl.pallas_call(
        functools.partial(_nam_stats_kernel, hw=HW, thw=thw_s, tiles_per_part=tpp),
        out_shape=(jax.ShapeDtypeStruct((P, C, L), jnp.float32),
                   jax.ShapeDtypeStruct((P, C, L), jnp.float32)),
        grid=(P, N, tpp),
        in_specs=[pl.BlockSpec((1, C, thw_s), lambda p, n, j: (n, 0, p * tpp + j))],
        out_specs=(pl.BlockSpec((1, C, L), lambda p, n, j: (p, 0, 0)),
                   pl.BlockSpec((1, C, L), lambda p, n, j: (p, 0, 0))),
        compiler_params=pltpu.CompilerParams(
            dimension_semantics=("parallel", "arbitrary", "arbitrary"),
            vmem_limit_bytes=scoped),
    )(x3)

    # ---- Fold BN stats + channel re-weighting into per-channel (C,) consts --
    ssum = jnp.sum(s_sum, axis=(0, 2))                        # (C,)
    ssq = jnp.sum(s_sq, axis=(0, 2))
    m = jnp.float32(N * HW)
    mean = ssum / m
    var = jnp.maximum(ssq / m - mean * mean, 0.0)             # biased var (BN fwd)
    inv_std = jax.lax.rsqrt(var + eps)
    abs_g = jnp.abs(g32)
    w_bn = abs_g / jnp.sum(abs_g)
    scale = (w_bn * g32 * inv_std).reshape(1, C, 1)
    shift = (w_bn * (b32 - g32 * mean * inv_std)).reshape(1, C, 1)

    # ---- Pass 2: elementwise apply (one read + one lane-dense write of x) ---
    thw_a = _pick_hw_tile(HW, C, itemsize, apply_budget)
    num_tiles_a = _cdiv(HW, thw_a)
    out3 = pl.pallas_call(
        _nam_apply_kernel,
        out_shape=jax.ShapeDtypeStruct((N, C, HW), x.dtype),
        grid=(N, num_tiles_a),
        in_specs=[pl.BlockSpec((1, C, thw_a), lambda n, j: (n, 0, j)),
                  pl.BlockSpec((1, C, 1), lambda n, j: (0, 0, 0)),
                  pl.BlockSpec((1, C, 1), lambda n, j: (0, 0, 0))],
        out_specs=pl.BlockSpec((1, C, thw_a), lambda n, j: (n, 0, j)),
        compiler_params=pltpu.CompilerParams(
            dimension_semantics=("parallel", "parallel"),
            vmem_limit_bytes=scoped),
    )(x3, scale, shift)

    return out3.reshape(N, C, H, W)


def _nam_reference(x, gamma, beta):
    """Pure-JAX reference mirroring the PyTorch forward (training-mode BN)."""
    mean = jnp.mean(x, axis=(0, 2, 3), keepdims=True)
    var = jnp.mean((x - mean) ** 2, axis=(0, 2, 3), keepdims=True)
    g = gamma.reshape(1, -1, 1, 1)
    b = beta.reshape(1, -1, 1, 1)
    bn = g * (x - mean) / jnp.sqrt(var + EPS) + b
    w_bn = jnp.abs(gamma) / jnp.sum(jnp.abs(gamma))
    scaled = w_bn.reshape(1, -1, 1, 1) * bn
    return jax.nn.sigmoid(scaled) * x


if __name__ == "__main__":
    key = jax.random.PRNGKey(0)
    k_x, k_g, k_b = jax.random.split(key, 3)

    N, C, H, W = 2, 4, 16, 16
    x = jax.random.normal(k_x, (N, C, H, W), dtype=jnp.float32)
    gamma = 1.0 + 0.1 * jax.random.normal(k_g, (C,), dtype=jnp.float32)
    beta = 0.1 * jax.random.normal(k_b, (C,), dtype=jnp.float32)
    ref = _nam_reference(x, gamma, beta)

    # 1) Fused fully-resident path (default dispatch for small activations).
    out = jax.block_until_ready(jax.jit(nam_forward)(x, gamma, beta))
    assert out.shape == (N, C, H, W)
    assert jnp.allclose(out, ref, atol=1e-5, rtol=1e-5), "fused path mismatch"

    # 2) Two-pass tiled path (128-aligned HW), forced by disabling fusion.
    two_pass = jax.jit(functools.partial(nam_forward, fused_threshold_bytes=0))
    out2 = jax.block_until_ready(two_pass(x, gamma, beta))
    assert jnp.allclose(out2, ref, atol=1e-5, rtol=1e-5), "two-pass mismatch"

    # 3) Two-pass tiled path with non-128-aligned HW (tail-mask + ragged blocks).
    N3, C3, H3, W3 = 2, 8, 14, 14
    x_r = jax.random.normal(k_x, (N3, C3, H3, W3), dtype=jnp.float32)
    g_r = 1.0 + 0.1 * jax.random.normal(k_g, (C3,), dtype=jnp.float32)
    b_r = 0.1 * jax.random.normal(k_b, (C3,), dtype=jnp.float32)
    out3 = jax.block_until_ready(
        jax.jit(functools.partial(nam_forward, fused_threshold_bytes=0))(x_r, g_r, b_r))
    assert jnp.allclose(out3, _nam_reference(x_r, g_r, b_r), atol=1e-5, rtol=1e-5), \
        "ragged two-pass mismatch"

    print("KERNEL_OK")
</pallas_src>

<mosaic_0001>
module attributes {stable_mosaic.version = 11 : i64} {
  func.func @_nam_fused_kernel(%arg0: memref<2x4x256xf32, #tpu.memory_space<vmem>>, %arg1: memref<1x4x1xf32, #tpu.memory_space<vmem>>, %arg2: memref<1x4x1xf32, #tpu.memory_space<vmem>>, %arg3: memref<2x4x256xf32, #tpu.memory_space<vmem>>) attributes {dimension_semantics = [], scalar_prefetch = 0 : i64, scratch_operands = 0 : i64, tpu.core_type = #tpu.core_type<tc>} {
    %c0 = arith.constant 0 : index
    %c0_0 = arith.constant 0 : index
    %c0_1 = arith.constant 0 : index
    %0 = vector.load %arg0[%c0, %c0_0, %c0_1] : memref<2x4x256xf32, #tpu.memory_space<vmem>>, vector<2x4x256xf32>
    %cst = arith.constant dense<0.000000e+00> : vector<2x4xf32>
    %1 = vector.multi_reduction <add>, %0, %cst [2] : vector<2x4x256xf32> to vector<2x4xf32>
    %2 = vector.shape_cast %1 : vector<2x4xf32> to vector<2x4x1xf32>
    %cst_2 = arith.constant dense<0.000000e+00> : vector<4x1xf32>
    %3 = vector.multi_reduction <add>, %2, %cst_2 [0] : vector<2x4x1xf32> to vector<4x1xf32>
    %4 = vector.shape_cast %3 : vector<4x1xf32> to vector<1x4x1xf32>
    %5 = arith.mulf %0, %0 : vector<2x4x256xf32>
    %cst_3 = arith.constant dense<0.000000e+00> : vector<2x4xf32>
    %6 = vector.multi_reduction <add>, %5, %cst_3 [2] : vector<2x4x256xf32> to vector<2x4xf32>
    %7 = vector.shape_cast %6 : vector<2x4xf32> to vector<2x4x1xf32>
    %cst_4 = arith.constant dense<0.000000e+00> : vector<4x1xf32>
    %8 = vector.multi_reduction <add>, %7, %cst_4 [0] : vector<2x4x1xf32> to vector<4x1xf32>
    %9 = vector.shape_cast %8 : vector<4x1xf32> to vector<1x4x1xf32>
    %cst_5 = arith.constant 5.120000e+02 : f32
    %10 = vector.broadcast %cst_5 : f32 to vector<1x4x1xf32>
    %11 = arith.divf %4, %10 : vector<1x4x1xf32>
    %cst_6 = arith.constant 5.120000e+02 : f32
    %12 = vector.broadcast %cst_6 : f32 to vector<1x4x1xf32>
    %13 = arith.divf %9, %12 : vector<1x4x1xf32>
    %14 = arith.mulf %11, %11 : vector<1x4x1xf32>
    %15 = arith.subf %13, %14 : vector<1x4x1xf32>
    %cst_7 = arith.constant 0.000000e+00 : f32
    %16 = vector.broadcast %cst_7 : f32 to vector<1x4x1xf32>
    %17 = arith.maximumf %15, %16 : vector<1x4x1xf32>
    %cst_8 = arith.constant 9.99999974E-6 : f32
    %18 = vector.broadcast %cst_8 : f32 to vector<1x4x1xf32>
    %19 = arith.addf %17, %18 : vector<1x4x1xf32>
    %20 = math.rsqrt %19 : vector<1x4x1xf32>
    %c0_9 = arith.constant 0 : index
    %c0_10 = arith.constant 0 : index
    %c0_11 = arith.constant 0 : index
    %21 = vector.load %arg1[%c0_9, %c0_10, %c0_11] : memref<1x4x1xf32, #tpu.memory_space<vmem>>, vector<1x4x1xf32>
    %c0_12 = arith.constant 0 : index
    %c0_13 = arith.constant 0 : index
    %c0_14 = arith.constant 0 : index
    %22 = vector.load %arg2[%c0_12, %c0_13, %c0_14] : memref<1x4x1xf32, #tpu.memory_space<vmem>>, vector<1x4x1xf32>
    %23 = math.absf %21 : vector<1x4x1xf32>
    %24 = vector.shape_cast %23 : vector<1x4x1xf32> to vector<1x1x4x1xf32>
    %cst_15 = arith.constant dense<0.000000e+00> : vector<1xf32>
    %25 = vector.multi_reduction <add>, %24, %cst_15 [1, 2, 3] : vector<1x1x4x1xf32> to vector<1xf32>
    %26 = vector.shape_cast %25 : vector<1xf32> to vector<1x1x1x1xf32>
    %27 = vector.extract %26[0, 0, 0, 0] : f32 from vector<1x1x1x1xf32>
    %28 = vector.broadcast %27 : f32 to vector<1x4x1xf32>
    %29 = arith.divf %23, %28 : vector<1x4x1xf32>
    %30 = arith.mulf %29, %21 : vector<1x4x1xf32>
    %31 = arith.mulf %30, %20 : vector<1x4x1xf32>
    %32 = arith.mulf %21, %11 : vector<1x4x1xf32>
    %33 = arith.mulf %32, %20 : vector<1x4x1xf32>
    %34 = arith.subf %22, %33 : vector<1x4x1xf32>
    %35 = arith.mulf %29, %34 : vector<1x4x1xf32>
    %c0_16 = arith.constant 0 : index
    %c0_17 = arith.constant 0 : index
    %c0_18 = arith.constant 0 : index
    %36 = vector.load %arg0[%c0_16, %c0_17, %c0_18] : memref<2x4x256xf32, #tpu.memory_space<vmem>>, vector<2x4x256xf32>
    %37 = vector.broadcast %31 : vector<1x4x1xf32> to vector<2x4x256xf32>
    %38 = arith.mulf %37, %36 : vector<2x4x256xf32>
    %39 = vector.broadcast %35 : vector<1x4x1xf32> to vector<2x4x256xf32>
    %40 = arith.addf %38, %39 : vector<2x4x256xf32>
    %41 = arith.negf %40 : vector<2x4x256xf32>
    %42 = math.exp %41 : vector<2x4x256xf32>
    %cst_19 = arith.constant 1.000000e+00 : f32
    %43 = vector.broadcast %cst_19 : f32 to vector<2x4x256xf32>
    %44 = arith.addf %43, %42 : vector<2x4x256xf32>
    %45 = arith.divf %43, %44 : vector<2x4x256xf32>
    %46 = arith.mulf %45, %36 : vector<2x4x256xf32>
    %c0_20 = arith.constant 0 : index
    %c0_21 = arith.constant 0 : index
    %c0_22 = arith.constant 0 : index
    %47 = vector.load %arg3[%c0_20, %c0_21, %c0_22] : memref<2x4x256xf32, #tpu.memory_space<vmem>>, vector<2x4x256xf32>
    tpu.vector_store %arg3[%c0_20, %c0_21, %c0_22], %46 {strides = array<i32>} : memref<2x4x256xf32, #tpu.memory_space<vmem>>, vector<2x4x256xf32>,
    return
  }
}

</mosaic_0001>

<bundles_post_ra>
// kernel: nam_forward.1
= control target key start
LH: loop header
LB: loop body
LE: loop exit
PB: predicated region body
PF: predicated region fallthrough
CT: control target
= control target key end

     0   :  { %vm22_vm0 = vcmask 1043456   ;;  %vm68_vm1 = vcmask 3072   ;;  %v179_v23 = vmov 0   ;;  %s263_s1 = inlined_call_operand.vmem [shape: f32[1,4,1], index: 1, kind: input, shape index: {}]   ;;  %s264_s0 = inlined_call_operand.vmem [shape: f32[2,4,256], index: 0, kind: input, shape index: {}]   ;;  %s265_s2 = inlined_call_operand.vmem [shape: f32[1,4,1], index: 2, kind: input, shape index: {}]   ;;  %s266_s3 = inlined_call_operand.vmem [shape: f32[2,4,256], index: 3, kind: output, shape index: {}]  }
   0x1   :  { %v203_v0 = vld [vmem:[%s263_s1] sm:$0xf]  ;;  %v208_v1 = vld [vmem:[%s264_s0 + $0x8] sm:$0xff]  ;;  %156 = vset.pattern.permute.xlu0 %v179_v23  ;;  %155 = vset.pattern.permute.xlu1 %v179_v23 }
   0x2   :  { %v213_v2 = vld [vmem:[%s264_s0] sm:$0xff]  ;;  %v67_v3 = vand.u32 2147483647, %v203_v0  ;;  %v218_v4 = vcombine.high %v208_v1, %v208_v1  ;;  %v28_v5 = vsel %vm22_vm0, %v208_v1, 0.0  ;;  %v37_v9 = vmul.f32 %v208_v1, %v208_v1 }
   0x3   :  { %v224_v6 = vcombine.high %v213_v2, %v213_v2  ;;  %v23_v7 = vsel %vm22_vm0, %v213_v2, 0.0  ;;  %v36_v8 = vmul.f32 %v213_v2, %v213_v2  ;;  %v66_v51 = vld [vmem:[%s265_s2] sm:$0xf] }
   0x4   :  { %v69_v10 = vsel %vm68_vm1, %v67_v3, 0.0  ;;  %v29_v11 = vsel %vm22_vm0, %v218_v4, 0.0  ;;  %v41_v17 = vcombine.high %v37_v9, %v37_v9  ;;  %v49_v18 = vsel %vm22_vm0, %v37_v9, 0.0 }
   0x5   :  { %v24_v12 = vsel %vm22_vm0, %v224_v6, 0.0  ;;  %70 = vadd.xlane.f32.xlu0 %v69_v10  ;;  %v30_v13 = vadd.f32 %v29_v11, %v28_v5  ;;  %v40_v15 = vcombine.high %v36_v8, %v36_v8  ;;  %v44_v16 = vsel %vm22_vm0, %v36_v8, 0.0 }
   0x6   :  { %v25_v14 = vadd.f32 %v24_v12, %v23_v7  ;;  %v50_v21 = vsel %vm22_vm0, %v41_v17, 0.0 }
   0x7   :  { %31 = vadd.xlane.f32.xlu1 %v30_v13  ;;  %v45_v19 = vsel %vm22_vm0, %v40_v15, 0.0  ;;  %v51_v22 = vadd.f32 %v50_v21, %v49_v18 }
   0x8   :  { %v46_v20 = vadd.f32 %v45_v19, %v44_v16 }
   0x9   :  { %26 = vadd.xlane.f32.xlu0 %v25_v14 }
   0xb   :  { %47 = vadd.xlane.f32.xlu1 %v46_v20 }
   0xd   :  { %52 = vadd.xlane.f32.xlu0 %v51_v22 }
  0x92   :  { %v71_v24 = vpop.xlane.xlu0 %70 }
  0x93   :  { %v72_v25 = vrot.slane %v71_v24, 4 }
  0x94   :  { %v32_v31 = vpop.xlane.xlu1 %31 }
  0x95   :  { %v73_v26 = vadd.f32 %v72_v25, %v71_v24  ;;  %v34_v33 = vsel %vm22_vm0, %v32_v31, 0.0 }
  0x96   :  { %v27_v32 = vpop.xlane.xlu0 %26 }
  0x97   :  { %v74_v27 = vrot.slane %v73_v26, 2  ;;  %v33_v34 = vsel %vm22_vm0, %v27_v32, 0.0 }
  0x98   :  { %v48_v35 = vpop.xlane.xlu1 %47  ;;  %v35_v37 = vadd.f32 %v34_v33, %v33_v34 }
  0x99   :  { %v75_v28 = vadd.f32 %v74_v27, %v73_v26  ;;  %v54_v38 = vsel %vm22_vm0, %v48_v35, 0.0 }
  0x9a   :  { %v53_v36 = vpop.xlane.xlu0 %52  ;;  %v58_v40 = vmul.f32 0.001953125, %v35_v37 }
  0x9b   :  { %v76_v29 = vrot.slane %v75_v28, 1  ;;  %v55_v39 = vsel %vm22_vm0, %v53_v36, 0.0 }
  0x9c   :  { %v56_v41 = vadd.f32 %v55_v39, %v54_v38  ;;  %v60_v42 = vmul.f32 %v58_v40, %v58_v40  ;;  %v84_v48 = vmul.f32 %v203_v0, %v58_v40 }
  0x9d   :  { %v77_v30 = vadd.f32 %v76_v29, %v75_v28 }
  0x9e   :  { %v59_v43 = vmul.f32 0.001953125, %v56_v41 }
  0x9f   :  { %152 = vpush %v77_v30 }
  0xa0   :  { %v61_v44 = vsub.f32 %v59_v43, %v60_v42 }
  0xa2   :  { %v62_v45 = vmax.f32 %v61_v44, 0.0 }
  0xa4   :  { %v63_v46 = vadd.f32 1e-05, %v62_v45 }
  0xa6   :  { %159 = vrsqrt.f32 %v63_v46 }
  0xb0   :  { %v160_v49 = vpop.eup %159 }
  0xb1   :  { %v85_v50 = vmul.f32 %v160_v49, %v84_v48 }
  0xb3   :  { %v86_v54 = vsub.f32 %v66_v51, %v85_v50 }
  0xd0   :  { %s153_s0 = spop %152 }
  0xd1   :  { %v79_v47 = vstv %s153_s0 }
  0xd2   :  { %161 = vrcp.f32 %v79_v47 }
  0xdc   :  { %v162_v52 = vpop.eup %161 }
  0xdd   :  { %v81_v53 = vmul.f32 %v162_v52, %v67_v3 }
  0xdf   :  { %v87_v55 = vmul.f32 %v86_v54, %v81_v53  ;;  %v82_v56 = vmul.f32 %v81_v53, %v203_v0 }
  0xe1   :  { %99 = vperm.xlu0 %156, %v87_v55   ;;  %v83_v57 = vmul.f32 %v160_v49, %v82_v56 }
  0xe3   :  { %90 = vperm.xlu1 %155, %v83_v57  }
 0x160   :  { %v100_v63 = vpop.permute.xlu0 %99 }
 0x162   :  { %v91_v58 = vpop.permute.xlu1 %90 }
 0x163   :  { %v93_v59 = vmul.f32 %v91_v58, %v213_v2  ;;  %v94_v60 = vmul.f32 %v91_v58, %v224_v6  ;;  %v95_v61 = vmul.f32 %v91_v58, %v208_v1  ;;  %v96_v62 = vmul.f32 %v91_v58, %v218_v4 }
 0x165   :  { %v102_v5 = vadd.f32 %v100_v63, %v93_v59  ;;  %v103_v7 = vadd.f32 %v100_v63, %v94_v60  ;;  %v104_v3 = vadd.f32 %v100_v63, %v95_v61  ;;  %v105_v8 = vadd.f32 %v100_v63, %v96_v62 }
 0x167   :  { %v148_v9 = vmul.f32 -1.442695, %v102_v5  ;;  %v149_v10 = vmul.f32 -1.442695, %v103_v7  ;;  %v150_v0 = vmul.f32 -1.442695, %v104_v3 }
 0x168   :  { %v151_v11 = vmul.f32 -1.442695, %v105_v8 }
 0x169   :  { %163 = vpow2.f32 %v148_v9 }
 0x16a   :  { %165 = vpow2.f32 %v149_v10 }
 0x16b   :  { %167 = vpow2.f32 %v150_v0 }
 0x16c   :  { %169 = vpow2.f32 %v151_v11 }
 0x173   :  { %v164_v12 = vpop.eup %163 }
 0x174   :  { %v166_v13 = vpop.eup %165  ;;  %v118_v14 = vadd.f32 1.0, %v164_v12 }
 0x175   :  { %v168_v15 = vpop.eup %167  ;;  %v119_v16 = vadd.f32 1.0, %v166_v13 }
 0x176   :  { %v170_v17 = vpop.eup %169  ;;  %v120_v18 = vadd.f32 1.0, %v168_v15  ;;  %171 = vrcp.f32 %v118_v14 }
 0x177   :  { %v121_v19 = vadd.f32 1.0, %v170_v17  ;;  %173 = vrcp.f32 %v119_v16 }
 0x178   :  { %175 = vrcp.f32 %v120_v18 }
 0x179   :  { %177 = vrcp.f32 %v121_v19 }
 0x180   :  { %v172_v20 = vpop.eup %171 }
 0x181   :  { %v174_v21 = vpop.eup %173  ;;  %v130_v22 = vmul.f32 %v172_v20, %v213_v2 }
 0x182   :  { %v176_v23 = vpop.eup %175  ;;  %v131_v24 = vmul.f32 %v174_v21, %v224_v6 }
 0x183   :  { %v178_v25 = vpop.eup %177  ;;  %v132_v26 = vmul.f32 %v176_v23, %v208_v1 }
 0x184   :  { %v133_v27 = vmul.f32 %v178_v25, %v218_v4  ;;  %v138_v28 = vcombine.low %v130_v22, %v131_v24 }
 0x186   :  { %v139_v29 = vcombine.low %v132_v26, %v133_v27  ;;  %142 = vst [vmem:[%s266_s3] sm:$0xff] %v138_v28 }
 0x188   :  { %143 = vst [vmem:[%s266_s3 + $0x8] sm:$0xff] %v139_v29 }

</bundles_post_ra>
